<compile_context>
chip_gen: v7x
topology: tpu7x:2x2x1
jax: 0.10.0
libtpu: 0.0.40
codegen_flags: <defaults>
</compile_context>

<pallas_src>
import functools

import jax
import jax.numpy as jnp
from jax.experimental import pallas as pl
from jax.experimental.pallas import tpu as pltpu


_MiB = 1024 * 1024
# Conservative working-set target that fits every generation with headroom
# (v5e/v6e physical VMEM 128 MiB, v7x 64 MiB; scoped defaults raised below).
_VMEM_BUDGET = 40 * _MiB
_VMEM_LIMIT_CAP = 56 * _MiB


# ---------------------------------------------------------------------------
# Kernels
# ---------------------------------------------------------------------------
def _bert_output_kernel_resident(x_ref, res_ref, w_ref, b_ref, gamma_ref,
                                 beta_ref, out_ref, *, ln_eps):
    """Single-shot matmul over full K (W resident in VMEM) + bias + residual + LN."""
    h = jnp.dot(x_ref[...], w_ref[...], preferred_element_type=jnp.float32)
    h = (h
         + b_ref[...].astype(jnp.float32)
         + res_ref[...].astype(jnp.float32))                  # (TM, H) f32

    # LayerNorm, two-pass variance in f32.
    mean = jnp.mean(h, axis=-1, keepdims=True)
    centered = h - mean
    var = jnp.mean(centered * centered, axis=-1, keepdims=True)
    inv = jax.lax.rsqrt(var + ln_eps)
    out = (centered * inv * gamma_ref[...].astype(jnp.float32)
           + beta_ref[...].astype(jnp.float32))
    out_ref[...] = out.astype(out_ref.dtype)


def _bert_output_kernel_ktiled(x_ref, res_ref, w_ref, b_ref, gamma_ref,
                               beta_ref, out_ref, acc_ref, *, ln_eps):
    """Fallback: K-tiled reduction with f32 VMEM accumulator."""
    k = pl.program_id(1)

    @pl.when(k == 0)
    def _():
        # Fold bias + residual into the accumulator init (frees the epilogue).
        acc_ref[...] = (res_ref[...].astype(jnp.float32)
                        + b_ref[...].astype(jnp.float32))

    acc_ref[...] += jnp.dot(x_ref[...], w_ref[...],
                            preferred_element_type=jnp.float32)

    @pl.when(k == pl.num_programs(1) - 1)
    def _():
        h = acc_ref[...]
        mean = jnp.mean(h, axis=-1, keepdims=True)
        centered = h - mean
        var = jnp.mean(centered * centered, axis=-1, keepdims=True)
        inv = jax.lax.rsqrt(var + ln_eps)
        out = (centered * inv * gamma_ref[...].astype(jnp.float32)
               + beta_ref[...].astype(jnp.float32))
        out_ref[...] = out.astype(out_ref.dtype)


# ---------------------------------------------------------------------------
# Wrapper
# ---------------------------------------------------------------------------
def _divisor_tiles(dim, candidates):
    tiles = [c for c in candidates if dim >= c and dim % c == 0]
    return tiles if tiles else [dim]


def bert_output(hidden_states, input_tensor, params, *, ln_eps=1e-12):
    """hidden_states: (B, S, I), input_tensor: (B, S, H). Returns (B, S, H)."""
    B, S, I = hidden_states.shape
    H = input_tensor.shape[-1]
    M = B * S

    # bf16 activations/weights streamed from HBM; residual stays in its dtype.
    x2d = hidden_states.reshape(M, I).astype(jnp.bfloat16)
    res2d = input_tensor.reshape(M, H)
    w = params["w"].astype(jnp.bfloat16)
    b = jnp.asarray(params["b"]).reshape(1, H)
    gamma = jnp.asarray(params["gamma"]).reshape(1, H)
    beta = jnp.asarray(params["beta"]).reshape(1, H)

    out_dtype = input_tensor.dtype
    res_bytes = res2d.dtype.itemsize
    out_bytes = jnp.dtype(out_dtype).itemsize

    tm_tiles = _divisor_tiles(M, (1024, 512, 256, 128, 64, 32, 16, 8))

    w_bytes = I * H * 2  # bf16
    # Resident path whenever W comfortably fits (BERT-base ~4.5 MiB, large ~8 MiB).
    use_resident = w_bytes <= 12 * _MiB

    if use_resident:
        def est(tm):
            return (2 * w_bytes                 # W (assume double-buffered)
                    + 2 * tm * I * 2            # x bf16, double-buffered
                    + 2 * tm * H * res_bytes    # residual
                    + 2 * tm * H * out_bytes    # output
                    + 8 * H * 4)                # bias/gamma/beta + slack

        TM = next((t for t in tm_tiles if est(t) <= _VMEM_BUDGET), tm_tiles[-1])
        vmem_limit = min(max(est(TM) + 8 * _MiB, 32 * _MiB), _VMEM_LIMIT_CAP)

        kernel = functools.partial(_bert_output_kernel_resident, ln_eps=ln_eps)
        out2d = pl.pallas_call(
            kernel,
            out_shape=jax.ShapeDtypeStruct((M, H), out_dtype),
            grid_spec=pltpu.PrefetchScalarGridSpec(
                num_scalar_prefetch=0,
                grid=(M // TM,),
                in_specs=[
                    pl.BlockSpec((TM, I), lambda i: (i, 0)),   # x tile (bf16)
                    pl.BlockSpec((TM, H), lambda i: (i, 0)),   # residual tile
                    pl.BlockSpec((I, H), lambda i: (0, 0)),    # W, VMEM-resident
                    pl.BlockSpec((1, H), lambda i: (0, 0)),    # bias
                    pl.BlockSpec((1, H), lambda i: (0, 0)),    # gamma
                    pl.BlockSpec((1, H), lambda i: (0, 0)),    # beta
                ],
                out_specs=pl.BlockSpec((TM, H), lambda i: (i, 0)),
            ),
            compiler_params=pltpu.CompilerParams(
                dimension_semantics=("parallel",),
                vmem_limit_bytes=vmem_limit,
            ),
        )(x2d, res2d, w, b, gamma, beta)
    else:
        TK = _divisor_tiles(I, (2048, 1024, 512, 256, 128))[0]

        def est(tm):
            return (2 * tm * TK * 2             # x tile bf16
                    + 2 * TK * H * 2            # W tile bf16
                    + 2 * tm * H * res_bytes    # residual
                    + 2 * tm * H * out_bytes    # output
                    + tm * H * 4                # f32 accumulator scratch
                    + 8 * H * 4)

        TM = next((t for t in tm_tiles if est(t) <= _VMEM_BUDGET), tm_tiles[-1])
        vmem_limit = min(max(est(TM) + 8 * _MiB, 32 * _MiB), _VMEM_LIMIT_CAP)

        kernel = functools.partial(_bert_output_kernel_ktiled, ln_eps=ln_eps)
        out2d = pl.pallas_call(
            kernel,
            out_shape=jax.ShapeDtypeStruct((M, H), out_dtype),
            grid_spec=pltpu.PrefetchScalarGridSpec(
                num_scalar_prefetch=0,
                grid=(M // TM, I // TK),
                in_specs=[
                    pl.BlockSpec((TM, TK), lambda i, k: (i, k)),  # x tile
                    pl.BlockSpec((TM, H), lambda i, k: (i, 0)),   # residual tile
                    pl.BlockSpec((TK, H), lambda i, k: (k, 0)),   # weight tile
                    pl.BlockSpec((1, H), lambda i, k: (0, 0)),    # bias
                    pl.BlockSpec((1, H), lambda i, k: (0, 0)),    # gamma
                    pl.BlockSpec((1, H), lambda i, k: (0, 0)),    # beta
                ],
                out_specs=pl.BlockSpec((TM, H), lambda i, k: (i, 0)),
                scratch_shapes=[pltpu.VMEM((TM, H), jnp.float32)],
            ),
            compiler_params=pltpu.CompilerParams(
                dimension_semantics=("parallel", "arbitrary"),
                vmem_limit_bytes=vmem_limit,
            ),
        )(x2d, res2d, w, b, gamma, beta)

    return out2d.reshape(B, S, H)


# ---------------------------------------------------------------------------
# Pure-JAX reference (mirrors bf16-matmul / f32-LayerNorm numerics)
# ---------------------------------------------------------------------------
def bert_output_ref(hidden_states, input_tensor, params, *, ln_eps=1e-12):
    xb = hidden_states.astype(jnp.bfloat16)
    wb = params["w"].astype(jnp.bfloat16)
    h = jnp.einsum("bsi,ih->bsh", xb, wb, preferred_element_type=jnp.float32)
    h = (h + jnp.asarray(params["b"]).reshape(1, 1, -1).astype(jnp.float32)
         + input_tensor.astype(jnp.float32))
    mean = jnp.mean(h, axis=-1, keepdims=True)
    var = jnp.mean((h - mean) ** 2, axis=-1, keepdims=True)
    out = ((h - mean) * jax.lax.rsqrt(var + ln_eps)
           * jnp.asarray(params["gamma"]).reshape(1, 1, -1).astype(jnp.float32)
           + jnp.asarray(params["beta"]).reshape(1, 1, -1).astype(jnp.float32))
    return out.astype(input_tensor.dtype)


def init_params(key, intermediate, hidden):
    k_w, k_b = jax.random.split(key)
    scale = 0.02
    return {
        "w": scale * jax.random.normal(k_w, (intermediate, hidden), jnp.float32),
        "b": scale * jax.random.normal(k_b, (1, hidden), jnp.float32),
        "gamma": jnp.ones((1, hidden), jnp.float32),
        "beta": jnp.zeros((1, hidden), jnp.float32),
    }


if __name__ == "__main__":
    # Small but lane-aligned shapes: H multiple of 128, rows multiple of 8.
    B, S, I, H = 2, 8, 512, 256

    key = jax.random.PRNGKey(0)
    k_x, k_r, k_p = jax.random.split(key, 3)

    hidden_states = jax.random.normal(k_x, (B, S, I), jnp.float32)
    input_tensor = jax.random.normal(k_r, (B, S, H), jnp.float32)
    params = init_params(k_p, I, H)

    out = bert_output(hidden_states, input_tensor, params)
    out = jax.block_until_ready(out)

    ref = bert_output_ref(hidden_states, input_tensor, params)
    assert out.shape == (B, S, H)
    assert jnp.allclose(out, ref, rtol=1e-3, atol=1e-3), "mismatch vs reference"

    print("KERNEL_OK")
</pallas_src>

<mosaic_0001>
module attributes {stable_mosaic.version = 11 : i64} {
  func.func @_bert_output_kernel_resident(%arg0: i32, %arg1: memref<16x512xbf16, #tpu.memory_space<vmem>>, %arg2: memref<16x256xf32, #tpu.memory_space<vmem>>, %arg3: memref<512x256xbf16, #tpu.memory_space<vmem>>, %arg4: memref<1x256xf32, #tpu.memory_space<vmem>>, %arg5: memref<1x256xf32, #tpu.memory_space<vmem>>, %arg6: memref<1x256xf32, #tpu.memory_space<vmem>>, %arg7: memref<16x256xf32, #tpu.memory_space<vmem>>) attributes {dimension_semantics = [#tpu.dimension_semantics<parallel>], iteration_bounds = array<i64: 1>, scalar_prefetch = 0 : i64, scratch_operands = 0 : i64, tpu.core_type = #tpu.core_type<tc>, window_params = [{transform_indices = @transform_0, window_bounds = array<i64: 16, 512>}, {transform_indices = @transform_1, window_bounds = array<i64: 16, 256>}, {pipeline_mode = #tpu.pipeline_mode<synchronous>, transform_indices = @transform_2, window_bounds = array<i64: 512, 256>}, {pipeline_mode = #tpu.pipeline_mode<synchronous>, transform_indices = @transform_3, window_bounds = array<i64: 1, 256>}, {pipeline_mode = #tpu.pipeline_mode<synchronous>, transform_indices = @transform_4, window_bounds = array<i64: 1, 256>}, {pipeline_mode = #tpu.pipeline_mode<synchronous>, transform_indices = @transform_5, window_bounds = array<i64: 1, 256>}, {transform_indices = @transform_6, window_bounds = array<i64: 16, 256>}]} {
    %c0 = arith.constant 0 : index
    %c0_0 = arith.constant 0 : index
    %0 = vector.load %arg1[%c0, %c0_0] : memref<16x512xbf16, #tpu.memory_space<vmem>>, vector<16x512xbf16>
    %c0_1 = arith.constant 0 : index
    %c0_2 = arith.constant 0 : index
    %1 = vector.load %arg3[%c0_1, %c0_2] : memref<512x256xbf16, #tpu.memory_space<vmem>>, vector<512x256xbf16>
    %cst = arith.constant dense<0.000000e+00> : vector<16x256xf32>
    %2 = tpu.matmul %0, %1, %cst {dimension_numbers = #tpu.dot_dimension_numbers<[1], [0], [0], [1], [0, 0, 1, 1], [], []>} : vector<16x512xbf16>, vector<512x256xbf16>, vector<16x256xf32> -> vector<16x256xf32>
    %c0_3 = arith.constant 0 : index
    %c0_4 = arith.constant 0 : index
    %3 = vector.load %arg4[%c0_3, %c0_4] : memref<1x256xf32, #tpu.memory_space<vmem>>, vector<1x256xf32>
    %4 = vector.broadcast %3 : vector<1x256xf32> to vector<16x256xf32>
    %5 = arith.addf %2, %4 : vector<16x256xf32>
    %c0_5 = arith.constant 0 : index
    %c0_6 = arith.constant 0 : index
    %6 = vector.load %arg2[%c0_5, %c0_6] : memref<16x256xf32, #tpu.memory_space<vmem>>, vector<16x256xf32>
    %7 = arith.addf %5, %6 : vector<16x256xf32>
    %cst_7 = arith.constant dense<0.000000e+00> : vector<16xf32>
    %8 = vector.multi_reduction <add>, %7, %cst_7 [1] : vector<16x256xf32> to vector<16xf32>
    %9 = vector.shape_cast %8 : vector<16xf32> to vector<16x1xf32>
    %cst_8 = arith.constant 2.560000e+02 : f32
    %10 = vector.broadcast %cst_8 : f32 to vector<16x1xf32>
    %11 = arith.divf %9, %10 : vector<16x1xf32>
    %12 = vector.broadcast %11 : vector<16x1xf32> to vector<16x256xf32>
    %13 = arith.subf %7, %12 : vector<16x256xf32>
    %14 = arith.mulf %13, %13 : vector<16x256xf32>
    %cst_9 = arith.constant dense<0.000000e+00> : vector<16xf32>
    %15 = vector.multi_reduction <add>, %14, %cst_9 [1] : vector<16x256xf32> to vector<16xf32>
    %16 = vector.shape_cast %15 : vector<16xf32> to vector<16x1xf32>
    %cst_10 = arith.constant 2.560000e+02 : f32
    %17 = vector.broadcast %cst_10 : f32 to vector<16x1xf32>
    %18 = arith.divf %16, %17 : vector<16x1xf32>
    %cst_11 = arith.constant 9.99999996E-13 : f32
    %19 = vector.broadcast %cst_11 : f32 to vector<16x1xf32>
    %20 = arith.addf %18, %19 : vector<16x1xf32>
    %21 = math.rsqrt %20 : vector<16x1xf32>
    %22 = vector.broadcast %21 : vector<16x1xf32> to vector<16x256xf32>
    %23 = arith.mulf %13, %22 : vector<16x256xf32>
    %c0_12 = arith.constant 0 : index
    %c0_13 = arith.constant 0 : index
    %24 = vector.load %arg5[%c0_12, %c0_13] : memref<1x256xf32, #tpu.memory_space<vmem>>, vector<1x256xf32>
    %25 = vector.broadcast %24 : vector<1x256xf32> to vector<16x256xf32>
    %26 = arith.mulf %23, %25 : vector<16x256xf32>
    %c0_14 = arith.constant 0 : index
    %c0_15 = arith.constant 0 : index
    %27 = vector.load %arg6[%c0_14, %c0_15] : memref<1x256xf32, #tpu.memory_space<vmem>>, vector<1x256xf32>
    %28 = vector.broadcast %27 : vector<1x256xf32> to vector<16x256xf32>
    %29 = arith.addf %26, %28 : vector<16x256xf32>
    %c0_16 = arith.constant 0 : index
    %c0_17 = arith.constant 0 : index
    %30 = vector.load %arg7[%c0_16, %c0_17] : memref<16x256xf32, #tpu.memory_space<vmem>>, vector<16x256xf32>
    tpu.vector_store %arg7[%c0_16, %c0_17], %29 {strides = array<i32>} : memref<16x256xf32, #tpu.memory_space<vmem>>, vector<16x256xf32>,
    return
  }
  func.func @transform_0(%arg0: i32) -> (i32, i32) {
    %c0_i32 = arith.constant 0 : i32
    %c0_i32_0 = arith.constant 0 : i32
    return %arg0, %c0_i32 : i32, i32
  }
  func.func @transform_1(%arg0: i32) -> (i32, i32) {
    %c0_i32 = arith.constant 0 : i32
    %c0_i32_0 = arith.constant 0 : i32
    return %arg0, %c0_i32 : i32, i32
  }
  func.func @transform_2(%arg0: i32) -> (i32, i32) {
    %c0_i32 = arith.constant 0 : i32
    %c0_i32_0 = arith.constant 0 : i32
    %c0_i32_1 = arith.constant 0 : i32
    return %c0_i32, %c0_i32_0 : i32, i32
  }
  func.func @transform_3(%arg0: i32) -> (i32, i32) {
    %c0_i32 = arith.constant 0 : i32
    %c0_i32_0 = arith.constant 0 : i32
    %c0_i32_1 = arith.constant 0 : i32
    return %c0_i32, %c0_i32_0 : i32, i32
  }
  func.func @transform_4(%arg0: i32) -> (i32, i32) {
    %c0_i32 = arith.constant 0 : i32
    %c0_i32_0 = arith.constant 0 : i32
    %c0_i32_1 = arith.constant 0 : i32
    return %c0_i32, %c0_i32_0 : i32, i32
  }
  func.func @transform_5(%arg0: i32) -> (i32, i32) {
    %c0_i32 = arith.constant 0 : i32
    %c0_i32_0 = arith.constant 0 : i32
    %c0_i32_1 = arith.constant 0 : i32
    return %c0_i32, %c0_i32_0 : i32, i32
  }
  func.func @transform_6(%arg0: i32) -> (i32, i32) {
    %c0_i32 = arith.constant 0 : i32
    %c0_i32_0 = arith.constant 0 : i32
    return %arg0, %c0_i32 : i32, i32
  }
}

</mosaic_0001>

<bundles_post_ra>
// kernel: tpu_custom_call.1
= control target key start
LH: loop header
LB: loop body
LE: loop exit
PB: predicated region body
PF: predicated region fallthrough
CT: control target
= control target key end

     0   :  { %11 = vsyncpa [#allocation3], 0  ;;  %s1066_s0 = inlined_call_operand.hbm [shape: bf16[16,512], index: 0, kind: input, shape index: {}]   ;;  %s1067_s1 = inlined_call_operand.hbm [shape: f32[16,256], index: 1, kind: input, shape index: {}]   ;;  %s1068_s2 = inlined_call_operand.hbm [shape: bf16[512,256], index: 2, kind: input, shape index: {}]   ;;  %s1069_s3 = inlined_call_operand.vmem [shape: f32[1,256], index: 3, kind: input, shape index: {}]   ;;  %s1070_s4 = inlined_call_operand.vmem [shape: f32[1,256], index: 4, kind: input, shape index: {}]   ;;  %s1071_s5 = inlined_call_operand.vmem [shape: f32[1,256], index: 5, kind: input, shape index: {}]   ;;  %s1072_s6 = inlined_call_operand.hbm [shape: f32[16,256], index: 6, kind: output, shape index: {}]  }
   0x1   :  { %12 = vsyncpa [#allocation6], 0 }
   0x2   :  { %13 = vsyncpa [#allocation4], 0  ;;  %s950_s21 = smov [#allocation5]   ;;  %s951_s23 = smov [#allocation2]  }
   0x3   :  { %s31_s22 = sshll.u32 %s950_s21, 4  ;;  %s19_s24 = sshll.u32 %s951_s23, 4  ;;  %s32_s22 = int_to_ptr.vmem [resolvable:$true] %s31_s22  ;;  %s993_s24 = int_to_ptr.vmem [resolvable:$true] %s19_s24 }
   0x4   :  { %s856_s27 = scalar_lea.hbm %s1067_s1, 512 }
   0x5   :  { %p857_p0 = scmp.ne.s32.totalorder %s1067_s1, %s856_s27  ;;  %p860_p1 = scmp.lt.u32.totalorder %s856_s27, %s1067_s1 }
   0x7   :  { %p862_p2 = pnand %p860_p1, %p857_p0 }
   0x9   :  { %865 = shalt.err (!%p862_p2)
}
   0xa   :  { %s866_s8 = scalar_lea.vmem %s32_s22, 512  ;;  %p871_p4 = scmp.lt.s32.totalorder %s32_s22, %s32_s22 }
   0xb   :  { %p867_p3 = scmp.ne.s32.totalorder %s32_s22, %s866_s8  ;;  %p872_p5 = scmp.lt.s32.totalorder %s866_s8, %s866_s8 }
   0xd   :  { %p873_p6 = por %p872_p5, %p871_p4 }
   0xf   :  { %p874_p7 = pnand %p873_p6, %p867_p3 }
  0x11   :  { %877 = shalt.err (!%p874_p7)
}
  0x12   :  { %s952_s9 = smov 256   ;;  %s953_s10 = smov 16  }
  0x13   :  { %37 = dma.hbm_to_vmem [thread:$0]  %s1067_s1, 512, %s32_s22, [#allocation6], %s952_s9, %s952_s9, %s953_s10  }
  0x14   :  { %s878_s15 = scalar_lea.hbm %s1066_s0, 512 }
  0x15   :  { %p879_p8 = scmp.ne.s32.totalorder %s1066_s0, %s878_s15  ;;  %p882_p9 = scmp.lt.u32.totalorder %s878_s15, %s1066_s0 }
  0x17   :  { %p884_p10 = pnand %p882_p9, %p879_p8 }
  0x19   :  { %887 = shalt.err (!%p884_p10)
}
  0x1a   :  { %s888_s20 = scalar_lea.vmem %s993_s24, 512  ;;  %p893_p12 = scmp.lt.s32.totalorder %s993_s24, %s993_s24 }
  0x1b   :  { %p889_p11 = scmp.ne.s32.totalorder %s993_s24, %s888_s20  ;;  %p894_p13 = scmp.lt.s32.totalorder %s888_s20, %s888_s20 }
  0x1d   :  { %p895_p0 = por %p894_p13, %p893_p12 }
  0x1f   :  { %p896_p1 = pnand %p895_p0, %p889_p11 }
  0x21   :  { %899 = shalt.err (!%p896_p1)
}
  0x22   :  { %25 = dma.hbm_to_vmem [thread:$0]  %s1066_s0, 512, %s993_s24, [#allocation3], %s952_s9, %s952_s9, %s953_s10  }
  0x23   :  { %s954_s22 = smov [#allocation7]   ;;  %s900_s27 = scalar_lea.hbm %s1068_s2, 8192 }
  0x24   :  { %s43_s23 = sshll.u32 %s954_s22, 4  ;;  %p901_p2 = scmp.ne.s32.totalorder %s1068_s2, %s900_s27  ;;  %s44_s23 = int_to_ptr.vmem [resolvable:$true] %s43_s23 }
  0x25   :  { %p904_p3 = scmp.lt.u32.totalorder %s900_s27, %s1068_s2 }
  0x27   :  { %p906_p4 = pnand %p904_p3, %p901_p2 }
  0x29   :  { %909 = shalt.err (!%p906_p4)
}
  0x2a   :  { %s910_s8 = scalar_lea.vmem %s44_s23, 8192  ;;  %p915_p6 = scmp.lt.s32.totalorder %s44_s23, %s44_s23 }
  0x2b   :  { %p911_p5 = scmp.ne.s32.totalorder %s44_s23, %s910_s8  ;;  %p916_p7 = scmp.lt.s32.totalorder %s910_s8, %s910_s8 }
  0x2d   :  { %p917_p8 = por %p916_p7, %p915_p6 }
  0x2f   :  { %p918_p9 = pnand %p917_p8, %p911_p5 }
  0x31   :  { %921 = shalt.err (!%p918_p9)
}
  0x32   :  { %s955_s0 = smov 128   ;;  %s956_s24 = smov 8  }
  0x33   :  { %49 = dma.hbm_to_vmem [thread:$0]  %s1068_s2, 8192, %s44_s23, [#allocation6], %s955_s0, %s955_s0, %s956_s24  }
  0x34   :  { %944 = dma.done.wait [#allocation3], 512  }
  0x35   :  { %945 = vsyncadd [#allocation3], 4294966784 }
  0x36   :  { %946 = dma.done.wait [#allocation6], 8704  }
  0x37   :  { %947 = vsyncadd [#allocation6], 4294958592  ;;  %v750_v0 = vld [vmem:[#allocation7 + $0x4] ss:$8 sps:$4 sm:$0xff]   ;;  %v754_v2 = vld [vmem:[#allocation7] ss:$8 sps:$4 sm:$0xff]  }
  0x38   :  { %v752_v1 = vld [vmem:[#allocation7 + $0x104] ss:$8 sps:$4 sm:$0xff]   ;;  %485 = vmatprep.subr.bf16.mxu1 %v750_v0  ;;  %v755_v3 = vld [vmem:[#allocation7 + $0x100] ss:$8 sps:$4 sm:$0xff]   ;;  %v756_v4 = vld [vmem:[#allocation7 + $0x14] ss:$8 sps:$4 sm:$0xff]  }
  0x39   :  { %528 = vmatprep.subr.bf16.mxu0 %v752_v1  ;;  %486 = vmatpush1.bf16.msra.mxu1 %v754_v2  ;;  %v758_v5 = vld [vmem:[#allocation7 + $0x114] ss:$8 sps:$4 sm:$0xff]   ;;  %v760_v6 = vld [vmem:[#allocation7 + $0x10] ss:$8 sps:$4 sm:$0xff]   ;;  %v762_v8 = vld [vmem:[#allocation7 + $0x24] ss:$8 sps:$4 sm:$0xff]  }
  0x3a   :  { %529 = vmatpush1.bf16.msra.mxu0 %v755_v3  ;;  %487 = vmatprep.subr.bf16.mxu1 %v756_v4  ;;  %v761_v7 = vld [vmem:[#allocation7 + $0x110] ss:$8 sps:$4 sm:$0xff]   ;;  %v764_v9 = vld [vmem:[#allocation7 + $0x124] ss:$8 sps:$4 sm:$0xff]   ;;  %v766_v10 = vld [vmem:[#allocation7 + $0x20] ss:$8 sps:$4 sm:$0xff]   ;;  %v135_v4 = vlaneseq }
  0x3b   :  { %530 = vmatprep.subr.bf16.mxu0 %v758_v5  ;;  %v767_v11 = vld [vmem:[#allocation7 + $0x120] ss:$8 sps:$4 sm:$0xff]   ;;  %v768_v12 = vld [vmem:[#allocation7 + $0x34] ss:$8 sps:$4 sm:$0xff]   ;;  %v772_v14 = vld [vmem:[#allocation7 + $0x30] ss:$8 sps:$4 sm:$0xff]  }
  0x3c   :  { %v770_v13 = vld [vmem:[#allocation7 + $0x134] ss:$8 sps:$4 sm:$0xff]   ;;  %v773_v15 = vld [vmem:[#allocation7 + $0x130] ss:$8 sps:$4 sm:$0xff]   ;;  %v774_v16 = vld [vmem:[#allocation7 + $0x44] ss:$8 sps:$4 sm:$0xff]  }
  0x3d   :  { %488 = vmatpush1.bf16.msra.mxu1 %v760_v6  ;;  %v776_v17 = vld [vmem:[#allocation7 + $0x144] ss:$8 sps:$4 sm:$0xff]   ;;  %v778_v18 = vld [vmem:[#allocation7 + $0x40] ss:$8 sps:$4 sm:$0xff]   ;;  %v780_v20 = vld [vmem:[#allocation7 + $0x54] ss:$8 sps:$4 sm:$0xff]  }
  0x3e   :  { %531 = vmatpush1.bf16.msra.mxu0 %v761_v7  ;;  %489 = vmatprep.subr.bf16.mxu1 %v762_v8  ;;  %v779_v19 = vld [vmem:[#allocation7 + $0x140] ss:$8 sps:$4 sm:$0xff]   ;;  %v782_v21 = vld [vmem:[#allocation7 + $0x154] ss:$8 sps:$4 sm:$0xff]   ;;  %v784_v22 = vld [vmem:[#allocation7 + $0x50] ss:$8 sps:$4 sm:$0xff]  }
  0x3f   :  { %532 = vmatprep.subr.bf16.mxu0 %v764_v9  ;;  %v785_v23 = vld [vmem:[#allocation7 + $0x150] ss:$8 sps:$4 sm:$0xff]   ;;  %v786_v24 = vld [vmem:[#allocation7 + $0x64] ss:$8 sps:$4 sm:$0xff]   ;;  %v790_v26 = vld [vmem:[#allocation7 + $0x60] ss:$8 sps:$4 sm:$0xff]  }
  0x40   :  { %v788_v25 = vld [vmem:[#allocation7 + $0x164] ss:$8 sps:$4 sm:$0xff]   ;;  %v791_v27 = vld [vmem:[#allocation7 + $0x160] ss:$8 sps:$4 sm:$0xff]   ;;  %v792_v28 = vld [vmem:[#allocation7 + $0x74] ss:$8 sps:$4 sm:$0xff]  }
  0x41   :  { %490 = vmatpush1.bf16.msra.mxu1 %v766_v10  ;;  %v794_v29 = vld [vmem:[#allocation7 + $0x174] ss:$8 sps:$4 sm:$0xff]   ;;  %v796_v30 = vld [vmem:[#allocation7 + $0x70] ss:$8 sps:$4 sm:$0xff]   ;;  %v798_v32 = vld [vmem:[#allocation7 + $0x84] ss:$8 sps:$4 sm:$0xff]  }
  0x42   :  { %533 = vmatpush1.bf16.msra.mxu0 %v767_v11  ;;  %491 = vmatprep.subr.bf16.mxu1 %v768_v12  ;;  %v797_v31 = vld [vmem:[#allocation7 + $0x170] ss:$8 sps:$4 sm:$0xff]   ;;  %v800_v33 = vld [vmem:[#allocation7 + $0x184] ss:$8 sps:$4 sm:$0xff]   ;;  %v802_v34 = vld [vmem:[#allocation7 + $0x80] ss:$8 sps:$4 sm:$0xff]  }
  0x43   :  { %534 = vmatprep.subr.bf16.mxu0 %v770_v13  ;;  %v803_v35 = vld [vmem:[#allocation7 + $0x180] ss:$8 sps:$4 sm:$0xff]   ;;  %v804_v36 = vld [vmem:[#allocation7 + $0x94] ss:$8 sps:$4 sm:$0xff]   ;;  %v808_v38 = vld [vmem:[#allocation7 + $0x90] ss:$8 sps:$4 sm:$0xff]  }
  0x44   :  { %v806_v37 = vld [vmem:[#allocation7 + $0x194] ss:$8 sps:$4 sm:$0xff]   ;;  %v809_v39 = vld [vmem:[#allocation7 + $0x190] ss:$8 sps:$4 sm:$0xff]   ;;  %v810_v40 = vld [vmem:[#allocation7 + $0xa4] ss:$8 sps:$4 sm:$0xff]  }
  0x45   :  { %492 = vmatpush1.bf16.msra.mxu1 %v772_v14  ;;  %v812_v41 = vld [vmem:[#allocation7 + $0x1a4] ss:$8 sps:$4 sm:$0xff]   ;;  %v814_v42 = vld [vmem:[#allocation7 + $0xa0] ss:$8 sps:$4 sm:$0xff]   ;;  %v816_v44 = vld [vmem:[#allocation7 + $0xb4] ss:$8 sps:$4 sm:$0xff]  }
  0x46   :  { %535 = vmatpush1.bf16.msra.mxu0 %v773_v15  ;;  %493 = vmatprep.subr.bf16.mxu1 %v774_v16  ;;  %v815_v43 = vld [vmem:[#allocation7 + $0x1a0] ss:$8 sps:$4 sm:$0xff]   ;;  %v818_v45 = vld [vmem:[#allocation7 + $0x1b4] ss:$8 sps:$4 sm:$0xff]   ;;  %v820_v46 = vld [vmem:[#allocation7 + $0xb0] ss:$8 sps:$4 sm:$0xff]  }
  0x47   :  { %536 = vmatprep.subr.bf16.mxu0 %v776_v17  ;;  %v848_v47 = vld [vmem:[#allocation2 + $0x4] ss:$16 sps:$4 sm:$0xff]   ;;  %v821_v48 = vld [vmem:[#allocation7 + $0x1b0] ss:$8 sps:$4 sm:$0xff]   ;;  %v851_v51 = vld [vmem:[#allocation2 + $0xc] ss:$16 sps:$4 sm:$0xff]  }
  0x48   :  { %v822_v49 = vld [vmem:[#allocation7 + $0xc4] ss:$8 sps:$4 sm:$0xff]   ;;  %517 = vmatprep.mubr.bf16.mxu1 %v848_v47  ;;  %560 = vmatprep.mubr.bf16.mxu0 %v851_v51  ;;  %v826_v52 = vld [vmem:[#allocation7 + $0xc0] ss:$8 sps:$4 sm:$0xff]   ;;  %v828_v54 = vld [vmem:[#allocation7 + $0xd4] ss:$8 sps:$4 sm:$0xff]  }
  0x49   :  { %494 = vmatpush1.bf16.msra.mxu1 %v778_v18  ;;  %v824_v50 = vld [vmem:[#allocation7 + $0x1c4] ss:$8 sps:$4 sm:$0xff]   ;;  %v827_v53 = vld [vmem:[#allocation7 + $0x1c0] ss:$8 sps:$4 sm:$0xff]   ;;  %v830_v55 = vld [vmem:[#allocation7 + $0x1d4] ss:$8 sps:$4 sm:$0xff]  }
  0x4a   :  { %537 = vmatpush1.bf16.msra.mxu0 %v779_v19  ;;  %495 = vmatprep.subr.bf16.mxu1 %v780_v20  ;;  %v832_v56 = vld [vmem:[#allocation7 + $0xd0] ss:$8 sps:$4 sm:$0xff]   ;;  %v834_v58 = vld [vmem:[#allocation7 + $0xe4] ss:$8 sps:$4 sm:$0xff]   ;;  %v838_v60 = vld [vmem:[#allocation7 + $0xe0] ss:$8 sps:$4 sm:$0xff]  }
  0x4b   :  { %538 = vmatprep.subr.bf16.mxu0 %v782_v21  ;;  %v833_v57 = vld [vmem:[#allocation7 + $0x1d0] ss:$8 sps:$4 sm:$0xff]   ;;  %v836_v59 = vld [vmem:[#allocation7 + $0x1e4] ss:$8 sps:$4 sm:$0xff]   ;;  %v839_v61 = vld [vmem:[#allocation7 + $0x1e0] ss:$8 sps:$4 sm:$0xff]  }
  0x4c   :  { %v840_v62 = vld [vmem:[#allocation7 + $0xf4] ss:$8 sps:$4 sm:$0xff]   ;;  %v844_v0 = vld [vmem:[#allocation7 + $0xf0] ss:$8 sps:$4 sm:$0xff]   ;;  %v136_v5 = vshrl.u32 %v135_v4, 7  ;;  %v571_v19 = vld [vmem:[#allocation5] sm:$0xff] }
  0x4d   :  { %496 = vmatpush1.bf16.msra.mxu1 %v784_v22  ;;  %v842_v63 = vld [vmem:[#allocation7 + $0x1f4] ss:$8 sps:$4 sm:$0xff]   ;;  %v845_v1 = vld [vmem:[#allocation7 + $0x1f0] ss:$8 sps:$4 sm:$0xff]   ;;  %v133_v7 = vld [vmem:[%s1069_s3] sm:$0x3] }
  0x4e   :  { %539 = vmatpush1.bf16.msra.mxu0 %v785_v23  ;;  %497 = vmatprep.subr.bf16.mxu1 %v786_v24  ;;  %v846_v2 = vld [vmem:[#allocation2] ss:$16 sps:$4 sm:$0xff]   ;;  %v849_v3 = vld [vmem:[#allocation2 + $0x8] ss:$16 sps:$4 sm:$0xff]   ;;  %v137_v6 = vsub.s32 0, %v136_v5  ;;  %v141_v8 = vsub.s32 1, %v136_v5 }
  0x4f   :  { %540 = vmatprep.subr.bf16.mxu0 %v788_v25  ;;  %v572_v24 = vld [vmem:[#allocation5 + $0x8] sm:$0xff]  ;;  %s957_s17 = smov [#allocation8]  }
  0x50   :  { %v138_v9 = vrot.slane %v133_v7, %v137_v6  ;;  %v142_v10 = vrot.slane %v133_v7, %v141_v8 }
  0x51   :  { %498 = vmatpush1.bf16.msra.mxu1 %v790_v26 }
  0x52   :  { %541 = vmatpush1.bf16.msra.mxu0 %v791_v27  ;;  %499 = vmatprep.subr.bf16.mxu1 %v792_v28  ;;  %v573_v28 = vld [vmem:[#allocation5 + $0x10] sm:$0xff] }
  0x53   :  { %542 = vmatprep.subr.bf16.mxu0 %v794_v29  ;;  %v574_v29 = vld [vmem:[#allocation5 + $0x18] sm:$0xff] }
  0x55   :  { %500 = vmatpush1.bf16.msra.mxu1 %v796_v30 }
  0x56   :  { %543 = vmatpush1.bf16.msra.mxu0 %v797_v31  ;;  %501 = vmatprep.subr.bf16.mxu1 %v798_v32 }
  0x57   :  { %544 = vmatprep.subr.bf16.mxu0 %v800_v33 }
  0x59   :  { %502 = vmatpush1.bf16.msra.mxu1 %v802_v34 }
  0x5a   :  { %545 = vmatpush1.bf16.msra.mxu0 %v803_v35  ;;  %503 = vmatprep.subr.bf16.mxu1 %v804_v36 }
  0x5b   :  { %546 = vmatprep.subr.bf16.mxu0 %v806_v37 }
  0x5d   :  { %504 = vmatpush1.bf16.msra.mxu1 %v808_v38 }
  0x5e   :  { %547 = vmatpush1.bf16.msra.mxu0 %v809_v39  ;;  %505 = vmatprep.subr.bf16.mxu1 %v810_v40 }
  0x5f   :  { %548 = vmatprep.subr.bf16.mxu0 %v812_v41 }
  0x61   :  { %506 = vmatpush1.bf16.msra.mxu1 %v814_v42 }
  0x62   :  { %549 = vmatpush1.bf16.msra.mxu0 %v815_v43  ;;  %507 = vmatprep.subr.bf16.mxu1 %v816_v44 }
  0x63   :  { %550 = vmatprep.subr.bf16.mxu0 %v818_v45 }
  0x65   :  { %508 = vmatpush1.bf16.msra.mxu1 %v820_v46 }
  0x66   :  { %551 = vmatpush1.bf16.msra.mxu0 %v821_v48  ;;  %509 = vmatprep.subr.bf16.mxu1 %v822_v49 }
  0x67   :  { %552 = vmatprep.subr.bf16.mxu0 %v824_v50 }
  0x69   :  { %510 = vmatpush1.bf16.msra.mxu1 %v826_v52 }
  0x6a   :  { %553 = vmatpush1.bf16.msra.mxu0 %v827_v53  ;;  %511 = vmatprep.subr.bf16.mxu1 %v828_v54 }
  0x6b   :  { %554 = vmatprep.subr.bf16.mxu0 %v830_v55 }
  0x6d   :  { %512 = vmatpush1.bf16.msra.mxu1 %v832_v56 }
  0x6e   :  { %555 = vmatpush1.bf16.msra.mxu0 %v833_v57  ;;  %513 = vmatprep.subr.bf16.mxu1 %v834_v58  ;;  %v612_v57 = vld [vmem:[%s1070_s4] sm:$0x3]  ;;  %s653_s4 = sshll.u32 %s957_s17, 4  ;;  %s654_s4 = int_to_ptr.vmem [resolvable:$true] %s653_s4 }
  0x6f   :  { %556 = vmatprep.subr.bf16.mxu0 %v836_v59  ;;  %v628_v58 = vld [vmem:[%s1071_s5] sm:$0x3]  ;;  %v617_v59 = vrot.slane %v612_v57, %v137_v6  ;;  %s922_s5 = scalar_lea.vmem %s654_s4, 512  ;;  %p927_p11 = scmp.lt.s32.totalorder %s654_s4, %s654_s4 }
  0x70   :  { %p923_p10 = scmp.ne.s32.totalorder %s654_s4, %s922_s5  ;;  %p928_p12 = scmp.lt.s32.totalorder %s922_s5, %s922_s5 }
  0x71   :  { %514 = vmatpush1.bf16.msra.mxu1 %v838_v60  ;;  %v621_v60 = vrot.slane %v612_v57, %v141_v8 }
  0x72   :  { %557 = vmatpush1.bf16.msra.mxu0 %v839_v61  ;;  %515 = vmatprep.subr.bf16.mxu1 %v840_v62  ;;  %v633_v62 = vrot.slane %v628_v58, %v137_v6  ;;  %p929_p13 = por %p928_p12, %p927_p11 }
  0x73   :  { %558 = vmatprep.subr.bf16.mxu0 %v842_v63  ;;  %v637_v63 = vrot.slane %v628_v58, %v141_v8 }
  0x74   :  { %p930_p0 = pnand %p929_p13, %p923_p10 }
  0x75   :  { %516 = vmatpush1.bf16.msra.mxu1 %v844_v0 }
  0x76   :  { %559 = vmatpush1.bf16.msra.mxu0 %v845_v1 }
  0x78   :  { %518 = vmatmul.mubr.bf16.vlgmr.msra.gmra.mrb[0].mxu1 %v846_v2 }
  0x79   :  { %561 = vmatmul.mubr.bf16.vlgmr.msra.gmra.mrb[0].mxu0 %v849_v3 }
 0x14b   :  { %v519_v11 = vpop.f32.mrb[0].mxu1 }
 0x14c   :  { %v562_v12 = vpop.f32.mrb[0].mxu0  ;;  %v520_v13 = vadd.f32 %v519_v11, %v138_v9  ;;  %v521_v14 = vpop.f32.mrb[1].mxu1 }
 0x14d   :  { %v564_v15 = vpop.f32.mrb[1].mxu0  ;;  %v522_v16 = vadd.f32 %v521_v14, %v142_v10  ;;  %v523_v17 = vpop.f32.mrb[2].mxu1 }
 0x14e   :  { %v566_v18 = vpop.f32.mrb[2].mxu0  ;;  %v563_v20 = vadd.f32 %v562_v12, %v520_v13  ;;  %v524_v21 = vadd.f32 %v523_v17, %v138_v9  ;;  %v525_v22 = vpop.f32.mrb[3].mxu1 }
 0x14f   :  { %v568_v23 = vpop.f32.mrb[3].mxu0  ;;  %v565_v25 = vadd.f32 %v564_v15, %v522_v16  ;;  %v526_v26 = vadd.f32 %v525_v22, %v142_v10 }
 0x150   :  { %v567_v27 = vadd.f32 %v566_v18, %v524_v21  ;;  %v575_v30 = vadd.f32 %v571_v19, %v563_v20 }
 0x151   :  { %v569_v31 = vadd.f32 %v568_v23, %v526_v26  ;;  %v576_v32 = vadd.f32 %v572_v24, %v565_v25 }
 0x152   :  { %v577_v33 = vadd.f32 %v573_v28, %v567_v27 }
 0x153   :  { %v578_v34 = vadd.f32 %v574_v29, %v569_v31  ;;  %v579_v35 = vadd.f32 %v576_v32, %v575_v30 }
 0x155   :  { %580 = vadd.xlane.f32.xlu0 %v579_v35  ;;  %v582_v36 = vadd.f32 %v578_v34, %v577_v33 }
 0x159   :  { %583 = vadd.xlane.f32.xlu0 %v582_v36 }
 0x1e2   :  { %v581_v37 = vpop.xlane.xlu0 %580 }
 0x1e3   :  { %v586_v38 = vmul.f32 0.00390625, %v581_v37 }
 0x1e5   :  { %v588_v39 = vsub.f32 %v575_v30, %v586_v38  ;;  %v589_v40 = vsub.f32 %v576_v32, %v586_v38 }
 0x1e6   :  { %v584_v41 = vpop.xlane.xlu0 %583 }
 0x1e7   :  { %v587_v42 = vmul.f32 0.00390625, %v584_v41  ;;  %v592_v43 = vmul.f32 %v588_v39, %v588_v39  ;;  %v593_v44 = vmul.f32 %v589_v40, %v589_v40 }
 0x1e9   :  { %v590_v45 = vsub.f32 %v577_v33, %v587_v42  ;;  %v591_v46 = vsub.f32 %v578_v34, %v587_v42  ;;  %v596_v47 = vadd.f32 %v593_v44, %v592_v43 }
 0x1eb   :  { %597 = vadd.xlane.f32.xlu1 %v596_v47  ;;  %v594_v48 = vmul.f32 %v590_v45, %v590_v45  ;;  %v595_v49 = vmul.f32 %v591_v46, %v591_v46 }
 0x1ed   :  { %v599_v50 = vadd.f32 %v595_v49, %v594_v48 }
 0x1ef   :  { %600 = vadd.xlane.f32.xlu1 %v599_v50 }
 0x278   :  { %v598_v51 = vpop.xlane.xlu1 %597 }
 0x279   :  { %v602_v52 = vmul.f32 0.00390625, %v598_v51 }
 0x27b   :  { %v604_v53 = vadd.f32 1e-12, %v602_v52 }
 0x27c   :  { %v601_v54 = vpop.xlane.xlu1 %600 }
 0x27d   :  { %852 = vrsqrt.f32 %v604_v53  ;;  %v603_v55 = vmul.f32 0.00390625, %v601_v54 }
 0x27f   :  { %v605_v56 = vadd.f32 1e-12, %v603_v55 }
 0x281   :  { %854 = vrsqrt.f32 %v605_v56 }
 0x287   :  { %v853_v61 = vpop.eup %852 }
 0x288   :  { %v608_v0 = vmul.f32 %v853_v61, %v588_v39  ;;  %v609_v1 = vmul.f32 %v853_v61, %v589_v40 }
 0x28a   :  { %v624_v2 = vmul.f32 %v617_v59, %v608_v0  ;;  %v625_v3 = vmul.f32 %v621_v60, %v609_v1 }
 0x28b   :  { %v855_v4 = vpop.eup %854 }
 0x28c   :  { %v610_v5 = vmul.f32 %v855_v4, %v590_v45  ;;  %v611_v7 = vmul.f32 %v855_v4, %v591_v46  ;;  %v640_v9 = vadd.f32 %v633_v62, %v624_v2  ;;  %v641_v10 = vadd.f32 %v637_v63, %v625_v3 }
 0x28e   :  { %v626_v11 = vmul.f32 %v617_v59, %v610_v5  ;;  %v627_v12 = vmul.f32 %v621_v60, %v611_v7  ;;  %644 = vst [vmem:[#allocation8] sm:$0xff] %v640_v9  ;;  %645 = vst [vmem:[#allocation8 + $0x8] sm:$0xff] %v641_v10 }
 0x290   :  { %v642_v13 = vadd.f32 %v633_v62, %v626_v11  ;;  %v643_v14 = vadd.f32 %v637_v63, %v627_v12 }
 0x292   :  { %646 = vst [vmem:[#allocation8 + $0x10] sm:$0xff] %v642_v13  ;;  %647 = vst [vmem:[#allocation8 + $0x18] sm:$0xff] %v643_v14 }
 0x293   :  { %933 = shalt.err (!%p930_p0)
}
 0x294   :  { %s934_s20 = scalar_lea.hbm %s1072_s6, 512 }
 0x295   :  { %p935_p1 = scmp.ne.s32.totalorder %s1072_s6, %s934_s20  ;;  %p938_p2 = scmp.lt.u32.totalorder %s934_s20, %s1072_s6 }
 0x297   :  { %p940_p3 = pnand %p938_p2, %p935_p1 }
 0x299   :  { %943 = shalt.err (!%p940_p3)
}
 0x29a   :  { %659 = dma.vmem_to_hbm [thread:$0]  %s654_s4, 512, %s1072_s6, [#allocation4], %s952_s9, %s952_s9, %s953_s10  }
 0x29b   :  { %948 = dma.done.wait [#allocation4], 512  }
 0x29c   :  { %949 = vsyncadd [#allocation4], 4294966784 }
 0x29d   :  { %663 = vsyncpa [#allocation3], 1 }
 0x29e   :  { %664 = vsyncpa [#allocation6], 1 }
 0x29f   :  { %665 = vsyncpa [#allocation4], 1 }

</bundles_post_ra>
